<compile_context>
chip_gen: v6e
topology: v6e:2x2x1
jax: 0.10.0
libtpu: 0.0.40
codegen_flags: <defaults>
</compile_context>

<pallas_src>
import jax
import jax.numpy as jnp
from jax.experimental import pallas as pl
from jax.experimental.pallas import tpu as pltpu

EPS = 1e-6  # eps_fn(half=False) equivalent for float32


def _iso_gauss_kernel(mu_ref, logvar_raw_ref, noise_ref,
                      z_ref, logvar_ref, partial_ref):
    """One (TB, H) batch tile: z = noise * exp(0.5*logvar) + mu (f32 math)."""
    i = pl.program_id(0)

    mu = mu_ref[...].astype(jnp.float32)
    logvar = logvar_raw_ref[...].astype(jnp.float32) + EPS
    std = jnp.exp(logvar * 0.5)
    z = noise_ref[...].astype(jnp.float32) * std + mu

    z_ref[...] = z.astype(z_ref.dtype)
    logvar_ref[...] = logvar.astype(logvar_ref.dtype)

    # Per-tile partial sums (f32) for the global means; reduced in the wrapper.
    partial_ref[i, 0] = jnp.sum(mu)
    partial_ref[i, 1] = jnp.sum(logvar)


def _pick_batch_tile(n_rows, half, dtype, vmem_budget_bytes=8 * 1024 * 1024):
    """Largest batch tile that is a multiple of 8, divides n_rows and fits the
    per-step VMEM budget (~5 streams, double-buffered). Leaves ample headroom
    under v7x's 32 MiB scoped-VMEM default (and v5e/v6e's larger VMEM)."""
    itemsize = max(jnp.dtype(dtype).itemsize, 4)
    per_row = 5 * 2 * half * itemsize
    cap = max(8, vmem_budget_bytes // per_row)
    if n_rows <= cap:
        return n_rows
    tb = (cap // 8) * 8
    while tb >= 8 and n_rows % tb != 0:
        tb -= 8
    return tb if tb >= 8 else n_rows  # fallback: single block


def isotropic_gaussian_forward(logits, noise=None, training=True,
                               batch_tile=None):
    """Returns (z, params_dict) mirroring IsotropicGaussian.forward.

    logits: (B, F) or (B, S, F) with F = continuous_size (even).
    noise:  standard-normal samples of shape logits.shape[:-1] + (F//2,)
            (required only when training=True).
    """
    if logits.ndim not in (2, 3):
        raise ValueError("unknown number of dims for isotropic gauss reparam")
    feat = logits.shape[-1]
    assert feat % 2 == 0
    half = feat // 2
    lead = logits.shape[:-1]
    n_rows = 1
    for d in lead:
        n_rows *= d

    mu = logits[..., :half]          # XLA slice, cheaply fused; not re-written
    logvar_raw = logits[..., half:]

    if not training:
        # Eval: z = mu. Skip the sampling kernel entirely (no noise, no exp,
        # no z HBM traffic). Means computed in f32 with plain XLA.
        logvar = (logvar_raw.astype(jnp.float32) + EPS).astype(logits.dtype)
        mu_mean = jnp.mean(mu.astype(jnp.float32))
        logvar_mean = jnp.mean(logvar_raw.astype(jnp.float32) + EPS)
        z = mu
        gauss = {'mu': mu, 'logvar': logvar,
                 'mu_mean': mu_mean, 'logvar_mean': logvar_mean}
        return z, {'z': z, 'logits': logits, 'gaussian': gauss}

    assert noise is not None and noise.shape == lead + (half,)

    # Fold any leading dims so the kernel always sees (n_rows, half).
    mu2 = mu.reshape(n_rows, half)
    lv2 = logvar_raw.reshape(n_rows, half)
    nz2 = noise.reshape(n_rows, half)

    tb = batch_tile if batch_tile is not None else _pick_batch_tile(
        n_rows, half, logits.dtype)
    assert n_rows % tb == 0, "batch tile must divide the folded batch"
    n_tiles = n_rows // tb

    vmem = pltpu.MemorySpace.VMEM
    smem = pltpu.MemorySpace.SMEM
    row_spec = pl.BlockSpec((tb, half), lambda i: (i, 0), memory_space=vmem)

    out_shapes = (
        jax.ShapeDtypeStruct((n_rows, half), logits.dtype),  # z
        jax.ShapeDtypeStruct((n_rows, half), logits.dtype),  # logvar
        jax.ShapeDtypeStruct((n_tiles, 2), jnp.float32),     # partial sums
    )

    z2, logvar2, partials = pl.pallas_call(
        _iso_gauss_kernel,
        out_shape=out_shapes,
        grid=(n_tiles,),
        in_specs=[row_spec, row_spec, row_spec],
        out_specs=(row_spec, row_spec,
                   pl.BlockSpec(memory_space=smem)),  # resident across grid
        compiler_params=pltpu.CompilerParams(
            # The partial-sum SMEM output is resident across the batch axis,
            # so keep it "arbitrary" (safe on 1-TC v5e/v6e and 2-TC v7x).
            dimension_semantics=("arbitrary",),
            vmem_limit_bytes=32 * 1024 * 1024,
        ),
    )(mu2, lv2, nz2)

    denom = jnp.float32(n_rows * half)
    mu_mean = jnp.sum(partials[:, 0]) / denom
    logvar_mean = jnp.sum(partials[:, 1]) / denom

    z = z2.reshape(lead + (half,))
    logvar = logvar2.reshape(lead + (half,))

    gauss = {'mu': mu, 'logvar': logvar,
             'mu_mean': mu_mean, 'logvar_mean': logvar_mean}
    return z, {'z': z, 'logits': logits, 'gaussian': gauss}


def _reference_forward(logits, noise):
    """Pure-JAX reference (training mode) for correctness checking."""
    half = logits.shape[-1] // 2
    mu = logits[..., :half]
    logvar = logits[..., half:] + EPS
    std = jnp.exp(0.5 * logvar)
    z = noise * std + mu
    return z, mu, logvar, jnp.mean(mu), jnp.mean(logvar)


def _check(z, params, logits, noise):
    z_r, mu_r, lv_r, mm_r, lvm_r = _reference_forward(logits, noise)
    assert jnp.allclose(z, z_r, atol=1e-5), "z mismatch"
    assert jnp.allclose(params['gaussian']['mu'], mu_r, atol=1e-6), "mu mismatch"
    assert jnp.allclose(params['gaussian']['logvar'], lv_r, atol=1e-6), "logvar mismatch"
    assert jnp.allclose(params['gaussian']['mu_mean'], mm_r, atol=1e-5), "mu_mean mismatch"
    assert jnp.allclose(params['gaussian']['logvar_mean'], lvm_r, atol=1e-5), "logvar_mean mismatch"


if __name__ == "__main__":
    # config = {'continuous_size': 32}  -> input_size = 32, output_size = 16
    batch_size = 2
    continuous_size = 32

    key = jax.random.PRNGKey(0)
    k1, k2, k3, k4, k5, k6 = jax.random.split(key, 6)

    # --- demo shape (2, 32): single grid step ---
    logits = jax.random.normal(k1, (batch_size, continuous_size), jnp.float32)
    noise = jax.random.normal(k2, (batch_size, continuous_size // 2), jnp.float32)
    z, params = isotropic_gaussian_forward(logits, noise, training=True)
    jax.block_until_ready(z)
    jax.block_until_ready(params['gaussian']['mu_mean'])
    _check(z, params, logits, noise)

    # --- multi-tile grid path: B=64 with forced batch tile 16 (4 grid steps) ---
    big_b = 64
    logits_b = jax.random.normal(k3, (big_b, continuous_size), jnp.float32)
    noise_b = jax.random.normal(k4, (big_b, continuous_size // 2), jnp.float32)
    z_b, params_b = isotropic_gaussian_forward(logits_b, noise_b,
                                               training=True, batch_tile=16)
    jax.block_until_ready(z_b)
    _check(z_b, params_b, logits_b, noise_b)

    # --- 3-D logits path (leading dims folded in the wrapper) ---
    logits_3d = jax.random.normal(k5, (2, 4, continuous_size), jnp.float32)
    noise_3d = jax.random.normal(k6, (2, 4, continuous_size // 2), jnp.float32)
    z3, params3 = isotropic_gaussian_forward(logits_3d, noise_3d, training=True)
    jax.block_until_ready(z3)
    _check(z3, params3, logits_3d, noise_3d)

    # --- eval mode: z == mu, no kernel launch, no noise required ---
    z_eval, params_eval = isotropic_gaussian_forward(logits, training=False)
    jax.block_until_ready(z_eval)
    assert jnp.allclose(z_eval, logits[:, :continuous_size // 2]), "eval z != mu"

    print("KERNEL_OK")
</pallas_src>

<mosaic_0001>
module attributes {stable_mosaic.version = 11 : i64} {
  func.func @_iso_gauss_kernel(%arg0: i32, %arg1: memref<2x16xf32, #tpu.memory_space<vmem>>, %arg2: memref<2x16xf32, #tpu.memory_space<vmem>>, %arg3: memref<2x16xf32, #tpu.memory_space<vmem>>, %arg4: memref<2x16xf32, #tpu.memory_space<vmem>>, %arg5: memref<2x16xf32, #tpu.memory_space<vmem>>, %arg6: memref<1x2xf32, #tpu.memory_space<smem>>) attributes {dimension_semantics = [#tpu.dimension_semantics<arbitrary>], iteration_bounds = array<i64: 1>, scalar_prefetch = 0 : i64, scratch_operands = 0 : i64, tpu.core_type = #tpu.core_type<tc>, window_params = [{transform_indices = @transform_0, window_bounds = array<i64: 2, 16>}, {transform_indices = @transform_1, window_bounds = array<i64: 2, 16>}, {transform_indices = @transform_2, window_bounds = array<i64: 2, 16>}, {transform_indices = @transform_3, window_bounds = array<i64: 2, 16>}, {transform_indices = @transform_4, window_bounds = array<i64: 2, 16>}, {transform_indices = @transform_5, window_bounds = array<i64: 1, 2>}]} {
    %c0 = arith.constant 0 : index
    %c0_0 = arith.constant 0 : index
    %0 = vector.load %arg1[%c0, %c0_0] : memref<2x16xf32, #tpu.memory_space<vmem>>, vector<2x16xf32>
    %c0_1 = arith.constant 0 : index
    %c0_2 = arith.constant 0 : index
    %1 = vector.load %arg2[%c0_1, %c0_2] : memref<2x16xf32, #tpu.memory_space<vmem>>, vector<2x16xf32>
    %cst = arith.constant 9.99999997E-7 : f32
    %2 = vector.broadcast %cst : f32 to vector<2x16xf32>
    %3 = arith.addf %1, %2 : vector<2x16xf32>
    %cst_3 = arith.constant 5.000000e-01 : f32
    %4 = vector.broadcast %cst_3 : f32 to vector<2x16xf32>
    %5 = arith.mulf %3, %4 : vector<2x16xf32>
    %6 = math.exp %5 : vector<2x16xf32>
    %c0_4 = arith.constant 0 : index
    %c0_5 = arith.constant 0 : index
    %7 = vector.load %arg3[%c0_4, %c0_5] : memref<2x16xf32, #tpu.memory_space<vmem>>, vector<2x16xf32>
    %8 = arith.mulf %7, %6 : vector<2x16xf32>
    %9 = arith.addf %8, %0 : vector<2x16xf32>
    %c0_6 = arith.constant 0 : index
    %c0_7 = arith.constant 0 : index
    %10 = vector.load %arg4[%c0_6, %c0_7] : memref<2x16xf32, #tpu.memory_space<vmem>>, vector<2x16xf32>
    tpu.vector_store %arg4[%c0_6, %c0_7], %9 {strides = array<i32>} : memref<2x16xf32, #tpu.memory_space<vmem>>, vector<2x16xf32>,
    %c0_8 = arith.constant 0 : index
    %c0_9 = arith.constant 0 : index
    %11 = vector.load %arg5[%c0_8, %c0_9] : memref<2x16xf32, #tpu.memory_space<vmem>>, vector<2x16xf32>
    tpu.vector_store %arg5[%c0_8, %c0_9], %3 {strides = array<i32>} : memref<2x16xf32, #tpu.memory_space<vmem>>, vector<2x16xf32>,
    %12 = vector.shape_cast %0 : vector<2x16xf32> to vector<1x2x16xf32>
    %cst_10 = arith.constant dense<0.000000e+00> : vector<1xf32>
    %13 = vector.multi_reduction <add>, %12, %cst_10 [1, 2] : vector<1x2x16xf32> to vector<1xf32>
    %14 = vector.shape_cast %13 : vector<1xf32> to vector<1x1x1xf32>
    %15 = vector.extract %14[0, 0, 0] : f32 from vector<1x1x1xf32>
    %16 = arith.index_cast %arg0 : i32 to index
    %c0_11 = arith.constant 0 : index
    %17 = memref.load %arg6[%16, %c0_11] : memref<1x2xf32, #tpu.memory_space<smem>>
    memref.store %15, %arg6[%16, %c0_11] : memref<1x2xf32, #tpu.memory_space<smem>>
    %18 = vector.shape_cast %3 : vector<2x16xf32> to vector<1x2x16xf32>
    %cst_12 = arith.constant dense<0.000000e+00> : vector<1xf32>
    %19 = vector.multi_reduction <add>, %18, %cst_12 [1, 2] : vector<1x2x16xf32> to vector<1xf32>
    %20 = vector.shape_cast %19 : vector<1xf32> to vector<1x1x1xf32>
    %21 = vector.extract %20[0, 0, 0] : f32 from vector<1x1x1xf32>
    %22 = arith.index_cast %arg0 : i32 to index
    %c1 = arith.constant 1 : index
    %23 = memref.load %arg6[%22, %c1] : memref<1x2xf32, #tpu.memory_space<smem>>
    memref.store %21, %arg6[%22, %c1] : memref<1x2xf32, #tpu.memory_space<smem>>
    return
  }
  func.func @transform_0(%arg0: i32) -> (i32, i32) {
    %c0_i32 = arith.constant 0 : i32
    %c0_i32_0 = arith.constant 0 : i32
    return %arg0, %c0_i32 : i32, i32
  }
  func.func @transform_1(%arg0: i32) -> (i32, i32) {
    %c0_i32 = arith.constant 0 : i32
    %c0_i32_0 = arith.constant 0 : i32
    return %arg0, %c0_i32 : i32, i32
  }
  func.func @transform_2(%arg0: i32) -> (i32, i32) {
    %c0_i32 = arith.constant 0 : i32
    %c0_i32_0 = arith.constant 0 : i32
    return %arg0, %c0_i32 : i32, i32
  }
  func.func @transform_3(%arg0: i32) -> (i32, i32) {
    %c0_i32 = arith.constant 0 : i32
    %c0_i32_0 = arith.constant 0 : i32
    return %arg0, %c0_i32 : i32, i32
  }
  func.func @transform_4(%arg0: i32) -> (i32, i32) {
    %c0_i32 = arith.constant 0 : i32
    %c0_i32_0 = arith.constant 0 : i32
    return %arg0, %c0_i32 : i32, i32
  }
  func.func @transform_5(%arg0: i32) -> (i32, i32) {
    %c0_i32 = arith.constant 0 : i32
    %c0_i32_0 = arith.constant 0 : i32
    %c0_i32_1 = arith.constant 0 : i32
    return %c0_i32, %c0_i32_0 : i32, i32
  }
}

</mosaic_0001>

<bundles_post_ra>
// kernel: tpu_custom_call.1
= control target key start
LH: loop header
LB: loop body
LE: loop exit
PB: predicated region body
PF: predicated region fallthrough
CT: control target
= control target key end

     0   :  { %11 = vsyncpa [#allocation3], 0  ;;  %s292_s0 = inlined_call_operand.hbm [shape: f32[2,16], index: 0, kind: input, shape index: {}]   ;;  %s293_s1 = inlined_call_operand.hbm [shape: f32[2,16], index: 1, kind: input, shape index: {}]   ;;  %s294_s2 = inlined_call_operand.vmem [shape: f32[2,16], index: 2, kind: input, shape index: {}]   ;;  %s295_s3 = inlined_call_operand.hbm [shape: f32[2,16], index: 3, kind: output, shape index: {0}]   ;;  %s296_s4 = inlined_call_operand.hbm [shape: f32[2,16], index: 4, kind: output, shape index: {1}]   ;;  %s297_s5 = inlined_call_operand.hbm [shape: f32[1,2], index: 5, kind: output, shape index: {2}]  }
   0x1   :  { %12 = vsyncpa [#allocation7], 0 }
   0x2   :  { %13 = vsyncpa [#allocation4], 0 }
   0x3   :  { %14 = vsyncpa [#allocation10], 0 }
   0x4   :  { %15 = vsyncpa [#allocation5], 0  ;;  %s235_s18 = smov [#allocation2]   ;;  %s236_s20 = smov [#allocation6]  }
   0x5   :  { %s22_s19 = sshll.u32 %s235_s18, 4  ;;  %s32_s21 = sshll.u32 %s236_s20, 4  ;;  %s23_s19 = int_to_ptr.vmem [resolvable:$true] %s22_s19  ;;  %s33_s21 = int_to_ptr.vmem [resolvable:$true] %s32_s21 }
   0x6   :  { %s145_s22 = scalar_lea.vmem %s23_s19, 32  ;;  %p150_p1 = scmp.lt.s32.totalorder %s23_s19, %s23_s19 }
   0x7   :  { %p146_p0 = scmp.ne.s32.totalorder %s23_s19, %s145_s22  ;;  %p151_p2 = scmp.lt.s32.totalorder %s145_s22, %s145_s22 }
   0x9   :  { %p152_p3 = por %p151_p2, %p150_p1 }
   0xb   :  { %p153_p4 = pnand %p152_p3, %p146_p0 }
   0xd   :  { %156 = shalt.err (!%p153_p4)
}
   0xe   :  { %25 = dma.hbm_to_vmem [thread:$0]  %s292_s0, 32, %s23_s19, [#allocation3]  }
   0xf   :  { %s165_s25 = scalar_lea.vmem %s33_s21, 32  ;;  %p170_p6 = scmp.lt.s32.totalorder %s33_s21, %s33_s21 }
  0x10   :  { %p166_p5 = scmp.ne.s32.totalorder %s33_s21, %s165_s25  ;;  %p171_p7 = scmp.lt.s32.totalorder %s165_s25, %s165_s25 }
  0x12   :  { %p172_p8 = por %p171_p7, %p170_p6 }
  0x14   :  { %p173_p9 = pnand %p172_p8, %p166_p5 }
  0x16   :  { %176 = shalt.err (!%p173_p9)
}
  0x17   :  { %35 = dma.hbm_to_vmem [thread:$0]  %s293_s1, 32, %s33_s21, [#allocation7]  }
  0x18   :  { %225 = dma.done.wait [#allocation3], 32  }
  0x19   :  { %226 = vsyncadd [#allocation3], 4294967264 }
  0x1a   :  { %227 = dma.done.wait [#allocation7], 32  }
  0x1b   :  { %228 = vsyncadd [#allocation7], 4294967264  ;;  %vm53_vm0 = vcmask 123904   ;;  %v44_v0 = vld [vmem:[#allocation2] sm:$0x3]  ;;  %s237_s28 = smov [#allocation8]  }
  0x1c   :  { %v45_v1 = vld [vmem:[#allocation6] sm:$0x3]  ;;  %v56_v3 = vsel %vm53_vm0, %v44_v0, 0.0  ;;  %v50_v7 = vld [vmem:[%s294_s2] sm:$0x3]  ;;  %s88_s29 = sshll.u32 %s237_s28, 4  ;;  %s89_s29 = int_to_ptr.vmem [resolvable:$true] %s88_s29 }
  0x1d   :  { %v46_v2 = vadd.f32 1e-06, %v45_v1  ;;  %57 = vadd.xlane.f32.xlu0 %v56_v3  ;;  %s238_s30 = smov [#allocation9]   ;;  %s177_s7 = scalar_lea.vmem %s89_s29, 32 }
  0x1e   :  { %s98_s6 = sshll.u32 %s238_s30, 4  ;;  %p178_p10 = scmp.ne.s32.totalorder %s89_s29, %s177_s7  ;;  %s99_s6 = int_to_ptr.vmem [resolvable:$true] %s98_s6 }
  0x1f   :  { %v47_v4 = vmul.f32 0.5, %v46_v2  ;;  %55 = vst.msk [vmem:[#allocation9] sm:$0x3] %vm53_vm0, %v46_v2  ;;  %v69_v5 = vsel %vm53_vm0, %v46_v2, 0.0  ;;  %p182_p11 = scmp.lt.s32.totalorder %s89_s29, %s89_s29  ;;  %p183_p12 = scmp.lt.s32.totalorder %s177_s7, %s177_s7 }
  0x21   :  { %v48_v6 = vmul.f32 1.442695, %v47_v4  ;;  %70 = vadd.xlane.f32.xlu0 %v69_v5  ;;  %p184_p13 = por %p183_p12, %p182_p11 }
  0x23   :  { %135 = vpow2.f32 %v48_v6  ;;  %p185_p0 = pnand %p184_p13, %p178_p10 }
  0x30   :  { %v136_v8 = vpop.eup %135 }
  0x31   :  { %v51_v9 = vmul.f32 %v136_v8, %v50_v7 }
  0x33   :  { %v52_v10 = vadd.f32 %v51_v9, %v44_v0 }
  0x35   :  { %54 = vst.msk [vmem:[#allocation8] sm:$0x3] %vm53_vm0, %v52_v10 }
  0x36   :  { %188 = shalt.err (!%p185_p0)
}
  0x37   :  { %91 = dma.vmem_to_hbm [thread:$0]  %s89_s29, 32, %s295_s3, [#allocation4]  }
  0x38   :  { %s197_s9 = scalar_lea.vmem %s99_s6, 32  ;;  %p202_p2 = scmp.lt.s32.totalorder %s99_s6, %s99_s6 }
  0x39   :  { %p198_p1 = scmp.ne.s32.totalorder %s99_s6, %s197_s9  ;;  %p203_p3 = scmp.lt.s32.totalorder %s197_s9, %s197_s9 }
  0x3b   :  { %p204_p4 = por %p203_p3, %p202_p2 }
  0x3d   :  { %p205_p5 = pnand %p204_p4, %p198_p1 }
  0x3f   :  { %208 = shalt.err (!%p205_p5)
}
  0x40   :  { %101 = dma.vmem_to_hbm [thread:$0]  %s99_s6, 32, %s296_s4, [#allocation10]  }
  0x41   :  { %s239_s4 = smov [#allocation11]  }
  0xa6   :  { %v58_v11 = vpop.xlane.xlu0 %57 }
  0xa7   :  { %v59_v12 = vrot.slane %v58_v11, 4 }
  0xa9   :  { %v60_v13 = vadd.f32 %v59_v12, %v58_v11 }
  0xaa   :  { %v71_v14 = vpop.xlane.xlu0 %70 }
  0xab   :  { %v61_v15 = vrot.slane %v60_v13, 2  ;;  %v72_v16 = vrot.slane %v71_v14, 4 }
  0xad   :  { %v73_v17 = vadd.f32 %v72_v16, %v71_v14  ;;  %v62_v18 = vadd.f32 %v61_v15, %v60_v13 }
  0xaf   :  { %v74_v19 = vrot.slane %v73_v17, 2  ;;  %v63_v20 = vrot.slane %v62_v18, 1 }
  0xb1   :  { %v75_v21 = vadd.f32 %v74_v19, %v73_v17  ;;  %v64_v22 = vadd.f32 %v63_v20, %v62_v18 }
  0xb3   :  { %126 = vpush %v64_v22  ;;  %v76_v23 = vrot.slane %v75_v21, 1 }
  0xb5   :  { %v77_v24 = vadd.f32 %v76_v23, %v75_v21 }
  0xb7   :  { %128 = vpush %v77_v24 }
  0xe4   :  { %s127_s3 = spop %126 }
  0xe5   :  { %68 = sst [smem:[#allocation11]] %s127_s3 }
  0xe8   :  { %s129_s12 = spop %128 }
  0xe9   :  { %81 = sst [smem:[#allocation11 + $0x1]] %s129_s12 }
  0xea   :  { %109 = dma.smem_to_hbm %s239_s4, 16, %s297_s5, [#allocation5]  }
  0xeb   :  { %229 = dma.done.wait [#allocation4], 32  }
  0xec   :  { %230 = vsyncadd [#allocation4], 4294967264 }
  0xed   :  { %231 = dma.done.wait [#allocation10], 32  }
  0xee   :  { %232 = vsyncadd [#allocation10], 4294967264 }
  0xef   :  { %233 = dma.done.wait [#allocation5], 16  }
  0xf0   :  { %234 = vsyncadd [#allocation5], 4294967280 }
  0xf1   :  { %119 = sfence }
  0xf2   :  { %120 = vsyncpa [#allocation3], 1 }
  0xf3   :  { %121 = vsyncpa [#allocation7], 1 }
  0xf4   :  { %122 = vsyncpa [#allocation4], 1 }
  0xf5   :  { %123 = vsyncpa [#allocation10], 1 }
  0xf6   :  { %124 = vsyncpa [#allocation5], 1 }

</bundles_post_ra>
